<compile_context>
chip_gen: v7x
topology: tpu7x:2x2x1
jax: 0.10.0
libtpu: 0.0.40
codegen_flags: <defaults>
</compile_context>

<pallas_src>
import jax
import jax.numpy as jnp
from jax.experimental import pallas as pl
from jax.experimental.pallas import tpu as pltpu

INPUT_DIM = 2      # env.observation_space.shape[0] for MountainCar-v0
N_ACTIONS = 3      # env.action_space.n for MountainCar-v0
HIDDEN = 256


def _round_up(n, m):
    return ((n + m - 1) // m) * m


def _policy_kernel(x_ref, w1_ref, bslab_ref, wslab_ref,
                   wac_ref, bac_ref, wcri_ref, bcri_ref,
                   logits_ref, value_ref):
    """Fused trunk + both heads for one batch tile."""
    x = x_ref[...]                                   # (bb, 2)   f32
    w1 = w1_ref[...]                                 # (2, 256)  f32
    b1 = bslab_ref[0:1, :]                           # (1, 256)  f32
    b2 = bslab_ref[1:2, :]
    b3 = bslab_ref[2:3, :]

    # fc1: K=2 contraction as two VPU broadcast multiply-adds (no MXU pass).
    h = b1 + x[:, 0:1] * w1[0:1, :] + x[:, 1:2] * w1[1:2, :]
    h = jnp.maximum(h, 0.0)

    # fc2 / fc3: bf16 MXU matmuls (single 256x256 pass each on v6e/v7x),
    # f32 accumulation, f32 bias + ReLU (v5e has no bf16 VPU path).
    h = jnp.dot(h.astype(jnp.bfloat16), wslab_ref[:, :HIDDEN],
                preferred_element_type=jnp.float32) + b2
    h = jnp.maximum(h, 0.0)

    h = jnp.dot(h.astype(jnp.bfloat16), wslab_ref[:, HIDDEN:],
                preferred_element_type=jnp.float32) + b3
    h = jnp.maximum(h, 0.0)

    # Heads in f32 (cheap: K=256, N=3/1) -> tighter critic value than bf16.
    logits_ref[...] = (jnp.dot(h, wac_ref[...],
                               preferred_element_type=jnp.float32) + bac_ref[...])
    value_ref[...] = (jnp.dot(h, wcri_ref[...],
                              preferred_element_type=jnp.float32) + bcri_ref[...])


def policy_forward_both(x, kparams, *, batch_block=1024):
    """One pallas_call computing BOTH heads.

    x: (B, INPUT_DIM) float32.  Returns (logits (B, N_ACTIONS), value (B, 1)).
    """
    x = x.astype(jnp.float32)
    B = x.shape[0]

    # Tile selection:
    #  * bb is a multiple of 8 (sublane constraint).
    #  * for anything beyond a tiny batch, keep >= 2 blocks so v7x's second
    #    TensorCore has work under dimension_semantics=("parallel",).
    #  * never pad by more than one 8-row step (avoids near-2x dead tiles).
    B8 = _round_up(B, 8)
    if B8 <= 16:
        bb = B8
    else:
        bb = min(batch_block, _round_up(pl.cdiv(B8, 2), 8))
    n_blocks = pl.cdiv(B8, bb)
    B_pad = n_blocks * bb
    if B_pad != B:
        x = jnp.pad(x, ((0, B_pad - B), (0, 0)))

    weights = (kparams["w1"], kparams["bslab"], kparams["wslab"],
               kparams["wac"], kparams["bac"], kparams["wcri"], kparams["bcri"])

    # Weights stay VMEM-resident across batch tiles (constant index_map).
    resident = lambda a: pl.BlockSpec(a.shape, lambda i, n=a.ndim: (0,) * n)

    weight_bytes = sum(int(w.size) * w.dtype.itemsize for w in weights)
    cost = pl.CostEstimate(
        flops=2 * B_pad * (INPUT_DIM * HIDDEN + 2 * HIDDEN * HIDDEN
                           + HIDDEN * (N_ACTIONS + 1)),
        transcendentals=0,
        bytes_accessed=B_pad * INPUT_DIM * 4 + weight_bytes
                       + B_pad * (N_ACTIONS + 1) * 4,
    )

    logits, value = pl.pallas_call(
        _policy_kernel,
        out_shape=(jax.ShapeDtypeStruct((B_pad, N_ACTIONS), jnp.float32),
                   jax.ShapeDtypeStruct((B_pad, 1), jnp.float32)),
        grid=(n_blocks,),
        in_specs=[pl.BlockSpec((bb, INPUT_DIM), lambda i: (i, 0))]
                 + [resident(w) for w in weights],
        out_specs=[pl.BlockSpec((bb, N_ACTIONS), lambda i: (i, 0)),
                   pl.BlockSpec((bb, 1), lambda i: (i, 0))],
        compiler_params=pltpu.CompilerParams(
            dimension_semantics=("parallel",),      # batch axis -> megacore / v7x TCs
            vmem_limit_bytes=32 * 1024 * 1024),     # <= physical VMEM on all of v5e/v6e/v7x
        cost_estimate=cost,
    )(x, *weights)

    if B_pad != B:
        logits = logits[:B]
        value = value[:B]
    return logits, value


def policy_forward(x, kparams, pol_type):
    """Module-parity API: returns the requested head (trunk computed once)."""
    logits, value = policy_forward_both(x, kparams)
    if pol_type == "actor":
        return logits
    if pol_type == "critic":
        return value
    raise ValueError(pol_type)


def init_params(key):
    """Deterministic f32 parameters matching the nn.Linear layers (stored (in,out))."""
    ks = jax.random.split(key, 10)

    def linear(kw, kb, fan_in, fan_out):
        # PyTorch nn.Linear default init: U(-1/sqrt(fan_in), 1/sqrt(fan_in))
        bound = 1.0 / jnp.sqrt(jnp.float32(fan_in))
        w = jax.random.uniform(kw, (fan_in, fan_out), jnp.float32, -bound, bound)
        b = jax.random.uniform(kb, (1, fan_out), jnp.float32, -bound, bound)
        return w, b

    w1, b1 = linear(ks[0], ks[1], INPUT_DIM, HIDDEN)
    w2, b2 = linear(ks[2], ks[3], HIDDEN, HIDDEN)
    w3, b3 = linear(ks[4], ks[5], HIDDEN, HIDDEN)
    w_ac, b_ac = linear(ks[6], ks[7], HIDDEN, N_ACTIONS)
    w_cri, b_cri = linear(ks[8], ks[9], HIDDEN, 1)
    return dict(w1=w1, b1=b1, w2=w2, b2=b2, w3=w3, b3=b3,
                w_ac=w_ac, b_ac=b_ac, w_cri=w_cri, b_cri=b_cri)


def pack_params(params):
    """Kernel-ready params: packed bf16 MXU slab + packed f32 bias slab + f32 heads."""
    wslab = jnp.concatenate([params["w2"], params["w3"]], axis=1)      # (256, 512)
    bslab = jnp.concatenate([params["b1"], params["b2"], params["b3"]], axis=0)  # (3, 256)
    return dict(
        w1=params["w1"].astype(jnp.float32),     # VPU layer stays f32 (2 KiB)
        bslab=bslab.astype(jnp.float32),
        wslab=wslab.astype(jnp.bfloat16),        # halves the dominant weight footprint
        wac=params["w_ac"].astype(jnp.float32),  # heads kept f32 (tiny, tight critic)
        bac=params["b_ac"].astype(jnp.float32),
        wcri=params["w_cri"].astype(jnp.float32),
        bcri=params["b_cri"].astype(jnp.float32),
    )


def _reference_forward(x, params, pol_type):
    h = jnp.maximum(x @ params["w1"] + params["b1"], 0.0)
    h = jnp.maximum(h @ params["w2"] + params["b2"], 0.0)
    h = jnp.maximum(h @ params["w3"] + params["b3"], 0.0)
    if pol_type == "actor":
        return h @ params["w_ac"] + params["b_ac"]
    return h @ params["w_cri"] + params["b_cri"]


if __name__ == "__main__":
    key = jax.random.PRNGKey(0)
    k_param, k_x = jax.random.split(key)
    params = init_params(k_param)
    kparams = pack_params(params)

    B = 8  # small batch of MountainCar observations
    x = jax.random.normal(k_x, (B, INPUT_DIM), jnp.float32)

    logits, value = policy_forward_both(x, kparams)   # single fused kernel call
    jax.block_until_ready((logits, value))

    ref_logits = _reference_forward(x, params, "actor")
    ref_value = _reference_forward(x, params, "critic")

    assert logits.shape == (B, N_ACTIONS) and value.shape == (B, 1)
    # bf16 trunk weights vs. pure-f32 reference: relative error well below 1e-2.
    assert jnp.allclose(logits, ref_logits, atol=2e-2, rtol=2e-2)
    assert jnp.allclose(value, ref_value, atol=2e-2, rtol=2e-2)

    # Module-parity single-head API returns the same values.
    assert jnp.array_equal(policy_forward(x, kparams, "actor"), logits)
    assert jnp.array_equal(policy_forward(x, kparams, "critic"), value)

    # Exercise a batch that is not a tile multiple (padding + >=2 blocks path).
    B2 = 257
    x2 = jax.random.normal(jax.random.PRNGKey(1), (B2, INPUT_DIM), jnp.float32)
    logits2, value2 = policy_forward_both(x2, kparams)
    jax.block_until_ready((logits2, value2))
    assert logits2.shape == (B2, N_ACTIONS) and value2.shape == (B2, 1)
    assert jnp.allclose(logits2, _reference_forward(x2, params, "actor"),
                        atol=2e-2, rtol=2e-2)
    assert jnp.allclose(value2, _reference_forward(x2, params, "critic"),
                        atol=2e-2, rtol=2e-2)

    print("KERNEL_OK")
</pallas_src>

<mosaic_0001>
module attributes {stable_mosaic.version = 11 : i64} {
  func.func @_policy_kernel(%arg0: i32, %arg1: memref<8x2xf32, #tpu.memory_space<vmem>>, %arg2: memref<2x256xf32, #tpu.memory_space<vmem>>, %arg3: memref<3x256xf32, #tpu.memory_space<vmem>>, %arg4: memref<256x512xbf16, #tpu.memory_space<vmem>>, %arg5: memref<256x3xf32, #tpu.memory_space<vmem>>, %arg6: memref<1x3xf32, #tpu.memory_space<vmem>>, %arg7: memref<256x1xf32, #tpu.memory_space<vmem>>, %arg8: memref<1x1xf32, #tpu.memory_space<vmem>>, %arg9: memref<8x3xf32, #tpu.memory_space<vmem>>, %arg10: memref<8x1xf32, #tpu.memory_space<vmem>>) attributes {dimension_semantics = [#tpu.dimension_semantics<parallel>], iteration_bounds = array<i64: 1>, scalar_prefetch = 0 : i64, scratch_operands = 0 : i64, tpu.core_type = #tpu.core_type<tc>, window_params = [{transform_indices = @transform_0, window_bounds = array<i64: 8, 2>}, {pipeline_mode = #tpu.pipeline_mode<synchronous>, transform_indices = @transform_1, window_bounds = array<i64: 2, 256>}, {pipeline_mode = #tpu.pipeline_mode<synchronous>, transform_indices = @transform_2, window_bounds = array<i64: 3, 256>}, {pipeline_mode = #tpu.pipeline_mode<synchronous>, transform_indices = @transform_3, window_bounds = array<i64: 256, 512>}, {pipeline_mode = #tpu.pipeline_mode<synchronous>, transform_indices = @transform_4, window_bounds = array<i64: 256, 3>}, {pipeline_mode = #tpu.pipeline_mode<synchronous>, transform_indices = @transform_5, window_bounds = array<i64: 1, 3>}, {pipeline_mode = #tpu.pipeline_mode<synchronous>, transform_indices = @transform_6, window_bounds = array<i64: 256, 1>}, {pipeline_mode = #tpu.pipeline_mode<synchronous>, transform_indices = @transform_7, window_bounds = array<i64: 1, 1>}, {transform_indices = @transform_8, window_bounds = array<i64: 8, 3>}, {transform_indices = @transform_9, window_bounds = array<i64: 8, 1>}]} {
    %c0 = arith.constant 0 : index
    %c0_0 = arith.constant 0 : index
    %0 = vector.load %arg1[%c0, %c0_0] : memref<8x2xf32, #tpu.memory_space<vmem>>, vector<8x2xf32>
    %c0_1 = arith.constant 0 : index
    %c0_2 = arith.constant 0 : index
    %1 = vector.load %arg2[%c0_1, %c0_2] : memref<2x256xf32, #tpu.memory_space<vmem>>, vector<2x256xf32>
    %c0_3 = arith.constant 0 : index
    %c0_4 = arith.constant 0 : index
    %2 = vector.load %arg3[%c0_3, %c0_4] : memref<3x256xf32, #tpu.memory_space<vmem>>, vector<1x256xf32>
    %c1 = arith.constant 1 : index
    %c0_5 = arith.constant 0 : index
    %3 = vector.load %arg3[%c1, %c0_5] : memref<3x256xf32, #tpu.memory_space<vmem>>, vector<1x256xf32>
    %c2 = arith.constant 2 : index
    %c0_6 = arith.constant 0 : index
    %4 = vector.load %arg3[%c2, %c0_6] : memref<3x256xf32, #tpu.memory_space<vmem>>, vector<1x256xf32>
    %5 = vector.extract_strided_slice %0 {offsets = [0, 0], sizes = [8, 1], strides = [1, 1]} : vector<8x2xf32> to vector<8x1xf32>
    %6 = vector.extract_strided_slice %1 {offsets = [0, 0], sizes = [1, 256], strides = [1, 1]} : vector<2x256xf32> to vector<1x256xf32>
    %7 = vector.broadcast %5 : vector<8x1xf32> to vector<8x256xf32>
    %8 = vector.broadcast %6 : vector<1x256xf32> to vector<8x256xf32>
    %9 = arith.mulf %7, %8 : vector<8x256xf32>
    %10 = vector.broadcast %2 : vector<1x256xf32> to vector<8x256xf32>
    %11 = arith.addf %10, %9 : vector<8x256xf32>
    %12 = vector.extract_strided_slice %0 {offsets = [0, 1], sizes = [8, 1], strides = [1, 1]} : vector<8x2xf32> to vector<8x1xf32>
    %13 = vector.extract_strided_slice %1 {offsets = [1, 0], sizes = [1, 256], strides = [1, 1]} : vector<2x256xf32> to vector<1x256xf32>
    %14 = vector.broadcast %12 : vector<8x1xf32> to vector<8x256xf32>
    %15 = vector.broadcast %13 : vector<1x256xf32> to vector<8x256xf32>
    %16 = arith.mulf %14, %15 : vector<8x256xf32>
    %17 = arith.addf %11, %16 : vector<8x256xf32>
    %cst = arith.constant 0.000000e+00 : f32
    %18 = vector.broadcast %cst : f32 to vector<8x256xf32>
    %19 = arith.maximumf %17, %18 : vector<8x256xf32>
    %20 = arith.truncf %19 : vector<8x256xf32> to vector<8x256xbf16>
    %c0_7 = arith.constant 0 : index
    %c0_8 = arith.constant 0 : index
    %21 = vector.load %arg4[%c0_7, %c0_8] : memref<256x512xbf16, #tpu.memory_space<vmem>>, vector<256x256xbf16>
    %cst_9 = arith.constant dense<0.000000e+00> : vector<8x256xf32>
    %22 = tpu.matmul %20, %21, %cst_9 {dimension_numbers = #tpu.dot_dimension_numbers<[1], [0], [0], [1], [0, 0, 1, 1], [], []>} : vector<8x256xbf16>, vector<256x256xbf16>, vector<8x256xf32> -> vector<8x256xf32>
    %23 = vector.broadcast %3 : vector<1x256xf32> to vector<8x256xf32>
    %24 = arith.addf %22, %23 : vector<8x256xf32>
    %cst_10 = arith.constant 0.000000e+00 : f32
    %25 = vector.broadcast %cst_10 : f32 to vector<8x256xf32>
    %26 = arith.maximumf %24, %25 : vector<8x256xf32>
    %27 = arith.truncf %26 : vector<8x256xf32> to vector<8x256xbf16>
    %c0_11 = arith.constant 0 : index
    %c256 = arith.constant 256 : index
    %28 = vector.load %arg4[%c0_11, %c256] : memref<256x512xbf16, #tpu.memory_space<vmem>>, vector<256x256xbf16>
    %cst_12 = arith.constant dense<0.000000e+00> : vector<8x256xf32>
    %29 = tpu.matmul %27, %28, %cst_12 {dimension_numbers = #tpu.dot_dimension_numbers<[1], [0], [0], [1], [0, 0, 1, 1], [], []>} : vector<8x256xbf16>, vector<256x256xbf16>, vector<8x256xf32> -> vector<8x256xf32>
    %30 = vector.broadcast %4 : vector<1x256xf32> to vector<8x256xf32>
    %31 = arith.addf %29, %30 : vector<8x256xf32>
    %cst_13 = arith.constant 0.000000e+00 : f32
    %32 = vector.broadcast %cst_13 : f32 to vector<8x256xf32>
    %33 = arith.maximumf %31, %32 : vector<8x256xf32>
    %c0_14 = arith.constant 0 : index
    %c0_15 = arith.constant 0 : index
    %34 = vector.load %arg5[%c0_14, %c0_15] : memref<256x3xf32, #tpu.memory_space<vmem>>, vector<256x3xf32>
    %cst_16 = arith.constant dense<0.000000e+00> : vector<8x3xf32>
    %35 = tpu.matmul %33, %34, %cst_16 {dimension_numbers = #tpu.dot_dimension_numbers<[1], [0], [0], [1], [0, 0, 1, 1], [], []>} : vector<8x256xf32>, vector<256x3xf32>, vector<8x3xf32> -> vector<8x3xf32>
    %c0_17 = arith.constant 0 : index
    %c0_18 = arith.constant 0 : index
    %36 = vector.load %arg6[%c0_17, %c0_18] : memref<1x3xf32, #tpu.memory_space<vmem>>, vector<1x3xf32>
    %37 = vector.broadcast %36 : vector<1x3xf32> to vector<8x3xf32>
    %38 = arith.addf %35, %37 : vector<8x3xf32>
    %c0_19 = arith.constant 0 : index
    %c0_20 = arith.constant 0 : index
    %39 = vector.load %arg9[%c0_19, %c0_20] : memref<8x3xf32, #tpu.memory_space<vmem>>, vector<8x3xf32>
    tpu.vector_store %arg9[%c0_19, %c0_20], %38 {strides = array<i32>} : memref<8x3xf32, #tpu.memory_space<vmem>>, vector<8x3xf32>,
    %c0_21 = arith.constant 0 : index
    %c0_22 = arith.constant 0 : index
    %40 = vector.load %arg7[%c0_21, %c0_22] : memref<256x1xf32, #tpu.memory_space<vmem>>, vector<256x1xf32>
    %cst_23 = arith.constant dense<0.000000e+00> : vector<8x1xf32>
    %41 = tpu.matmul %33, %40, %cst_23 {dimension_numbers = #tpu.dot_dimension_numbers<[1], [0], [0], [1], [0, 0, 1, 1], [], []>} : vector<8x256xf32>, vector<256x1xf32>, vector<8x1xf32> -> vector<8x1xf32>
    %c0_24 = arith.constant 0 : index
    %c0_25 = arith.constant 0 : index
    %42 = vector.load %arg8[%c0_24, %c0_25] : memref<1x1xf32, #tpu.memory_space<vmem>>, vector<1x1xf32>
    %43 = vector.broadcast %42 : vector<1x1xf32> to vector<8x1xf32>
    %44 = arith.addf %41, %43 : vector<8x1xf32>
    %c0_26 = arith.constant 0 : index
    %c0_27 = arith.constant 0 : index
    %45 = vector.load %arg10[%c0_26, %c0_27] : memref<8x1xf32, #tpu.memory_space<vmem>>, vector<8x1xf32>
    tpu.vector_store %arg10[%c0_26, %c0_27], %44 {strides = array<i32>} : memref<8x1xf32, #tpu.memory_space<vmem>>, vector<8x1xf32>,
    return
  }
  func.func @transform_0(%arg0: i32) -> (i32, i32) {
    %c0_i32 = arith.constant 0 : i32
    %c0_i32_0 = arith.constant 0 : i32
    return %arg0, %c0_i32 : i32, i32
  }
  func.func @transform_1(%arg0: i32) -> (i32, i32) {
    %c0_i32 = arith.constant 0 : i32
    %c0_i32_0 = arith.constant 0 : i32
    %c0_i32_1 = arith.constant 0 : i32
    return %c0_i32, %c0_i32_0 : i32, i32
  }
  func.func @transform_2(%arg0: i32) -> (i32, i32) {
    %c0_i32 = arith.constant 0 : i32
    %c0_i32_0 = arith.constant 0 : i32
    %c0_i32_1 = arith.constant 0 : i32
    return %c0_i32, %c0_i32_0 : i32, i32
  }
  func.func @transform_3(%arg0: i32) -> (i32, i32) {
    %c0_i32 = arith.constant 0 : i32
    %c0_i32_0 = arith.constant 0 : i32
    %c0_i32_1 = arith.constant 0 : i32
    return %c0_i32, %c0_i32_0 : i32, i32
  }
  func.func @transform_4(%arg0: i32) -> (i32, i32) {
    %c0_i32 = arith.constant 0 : i32
    %c0_i32_0 = arith.constant 0 : i32
    %c0_i32_1 = arith.constant 0 : i32
    return %c0_i32, %c0_i32_0 : i32, i32
  }
  func.func @transform_5(%arg0: i32) -> (i32, i32) {
    %c0_i32 = arith.constant 0 : i32
    %c0_i32_0 = arith.constant 0 : i32
    %c0_i32_1 = arith.constant 0 : i32
    return %c0_i32, %c0_i32_0 : i32, i32
  }
  func.func @transform_6(%arg0: i32) -> (i32, i32) {
    %c0_i32 = arith.constant 0 : i32
    %c0_i32_0 = arith.constant 0 : i32
    %c0_i32_1 = arith.constant 0 : i32
    return %c0_i32, %c0_i32_0 : i32, i32
  }
  func.func @transform_7(%arg0: i32) -> (i32, i32) {
    %c0_i32 = arith.constant 0 : i32
    %c0_i32_0 = arith.constant 0 : i32
    %c0_i32_1 = arith.constant 0 : i32
    return %c0_i32, %c0_i32_0 : i32, i32
  }
  func.func @transform_8(%arg0: i32) -> (i32, i32) {
    %c0_i32 = arith.constant 0 : i32
    %c0_i32_0 = arith.constant 0 : i32
    return %arg0, %c0_i32 : i32, i32
  }
  func.func @transform_9(%arg0: i32) -> (i32, i32) {
    %c0_i32 = arith.constant 0 : i32
    %c0_i32_0 = arith.constant 0 : i32
    return %arg0, %c0_i32 : i32, i32
  }
}

</mosaic_0001>

<bundles_post_ra>
// kernel: tpu_custom_call.1
= control target key start
LH: loop header
LB: loop body
LE: loop exit
PB: predicated region body
PF: predicated region fallthrough
CT: control target
= control target key end

     0   :  { %v1135_v0 = vmov 0   ;;  %v1136_v6 = vmov 1   ;;  %v46_v63 = vlaneseq  ;;  %vm712_vm0 = vcmask 23552   ;;  %s1614_s0 = inlined_call_operand.vmem [shape: f32[8,2], index: 0, kind: input, shape index: {}]   ;;  %s1615_s3 = inlined_call_operand.vmem [shape: bf16[256,512], index: 3, kind: input, shape index: {}]   ;;  %s1616_s1 = inlined_call_operand.vmem [shape: f32[2,256], index: 1, kind: input, shape index: {}]   ;;  %s1617_s2 = inlined_call_operand.vmem [shape: f32[3,256], index: 2, kind: input, shape index: {}]   ;;  %s1618_s4 = inlined_call_operand.vmem [shape: f32[256,3], index: 4, kind: input, shape index: {}]   ;;  %s1619_s6 = inlined_call_operand.vmem [shape: f32[256,1], index: 6, kind: input, shape index: {}]   ;;  %s1620_s7 = inlined_call_operand.<no memory space> [shape: f32[1,1], index: 7, kind: input, shape index: {}]   ;;  %s1621_s5 = inlined_call_operand.vmem [shape: f32[1,3], index: 5, kind: input, shape index: {}]   ;;  %s1622_s8 = inlined_call_operand.vmem [shape: f32[8,3], index: 8, kind: output, shape index: {0}]   ;;  %s1623_s9 = inlined_call_operand.vmem [shape: f32[8,1], index: 9, kind: output, shape index: {1}]  }
   0x1   :  { %1037 = vset.pattern.permute.xlu0 %v1135_v0  ;;  %v33_v1 = vld [vmem:[%s1614_s0] sm:$0xff]  ;;  %v1087_v16 = vld [vmem:[%s1615_s3 + $0xc] ss:$16 sps:$4 sm:$0xff]   ;;  %v1089_v17 = vld [vmem:[%s1615_s3 + $0x8] ss:$16 sps:$4 sm:$0xff]   ;;  %vm823_vm1 = vcmask 7168  }
   0x2   :  { %42 = vperm.xlu0 %1037, %v33_v1   ;;  %v1039_v2 = vld [vmem:[%s1615_s3 + $0x4] ss:$16 sps:$4 sm:$0xff]   ;;  %v1041_v3 = vld [vmem:[%s1615_s3] ss:$16 sps:$4 sm:$0xff]   ;;  %v1090_v19 = vld [vmem:[%s1615_s3 + $0x2c] ss:$16 sps:$4 sm:$0xff]   ;;  %560 = vmatprep.subr.bf16.mxu1 %v1087_v16 }
   0x3   :  { %v1042_v4 = vld [vmem:[%s1615_s3 + $0x24] ss:$16 sps:$4 sm:$0xff]   ;;  %312 = vmatprep.subr.bf16.mxu0 %v1039_v2  ;;  %v1044_v5 = vld [vmem:[%s1615_s3 + $0x20] ss:$16 sps:$4 sm:$0xff]   ;;  %561 = vmatpush1.bf16.msra.mxu1 %v1089_v17  ;;  %v1092_v21 = vld [vmem:[%s1615_s3 + $0x28] ss:$16 sps:$4 sm:$0xff]  }
   0x4   :  { %313 = vmatpush1.bf16.msra.mxu0 %v1041_v3  ;;  %v1045_v7 = vld [vmem:[%s1615_s3 + $0x44] ss:$16 sps:$4 sm:$0xff]   ;;  %v1047_v8 = vld [vmem:[%s1615_s3 + $0x40] ss:$16 sps:$4 sm:$0xff]   ;;  %562 = vmatprep.subr.bf16.mxu1 %v1090_v19  ;;  %v1093_v22 = vld [vmem:[%s1615_s3 + $0x4c] ss:$16 sps:$4 sm:$0xff]  }
   0x5   :  { %314 = vmatprep.subr.bf16.mxu0 %v1042_v4  ;;  %v1048_v9 = vld [vmem:[%s1615_s3 + $0x64] ss:$16 sps:$4 sm:$0xff]   ;;  %v1050_v10 = vld [vmem:[%s1615_s3 + $0x60] ss:$16 sps:$4 sm:$0xff]   ;;  %v1095_v25 = vld [vmem:[%s1615_s3 + $0x48] ss:$16 sps:$4 sm:$0xff]  }
   0x6   :  { %1038 = vset.pattern.permute.xlu0 %v1136_v6  ;;  %v1051_v11 = vld [vmem:[%s1615_s3 + $0x84] ss:$16 sps:$4 sm:$0xff]   ;;  %v1053_v12 = vld [vmem:[%s1615_s3 + $0x80] ss:$16 sps:$4 sm:$0xff]   ;;  %v1096_v26 = vld [vmem:[%s1615_s3 + $0x6c] ss:$16 sps:$4 sm:$0xff]  }
   0x7   :  { %80 = vperm.xlu0 %1038, %v33_v1   ;;  %v1054_v13 = vld [vmem:[%s1615_s3 + $0xa4] ss:$16 sps:$4 sm:$0xff]   ;;  %v1056_v14 = vld [vmem:[%s1615_s3 + $0xa0] ss:$16 sps:$4 sm:$0xff]   ;;  %563 = vmatpush1.bf16.msra.mxu1 %v1092_v21  ;;  %v1098_v29 = vld [vmem:[%s1615_s3 + $0x68] ss:$16 sps:$4 sm:$0xff]  }
   0x8   :  { %315 = vmatpush1.bf16.msra.mxu0 %v1044_v5  ;;  %v1057_v15 = vld [vmem:[%s1615_s3 + $0xc4] ss:$16 sps:$4 sm:$0xff]   ;;  %v1059_v18 = vld [vmem:[%s1615_s3 + $0xc0] ss:$16 sps:$4 sm:$0xff]   ;;  %564 = vmatprep.subr.bf16.mxu1 %v1093_v22  ;;  %v1099_v30 = vld [vmem:[%s1615_s3 + $0x8c] ss:$16 sps:$4 sm:$0xff]  }
   0x9   :  { %316 = vmatprep.subr.bf16.mxu0 %v1045_v7  ;;  %v1060_v20 = vld [vmem:[%s1615_s3 + $0xe4] ss:$16 sps:$4 sm:$0xff]   ;;  %v1062_v23 = vld [vmem:[%s1615_s3 + $0xe0] ss:$16 sps:$4 sm:$0xff]   ;;  %v1101_v33 = vld [vmem:[%s1615_s3 + $0x88] ss:$16 sps:$4 sm:$0xff]  }
   0xa   :  { %v1063_v24 = vld [vmem:[%s1615_s3 + $0x104] ss:$16 sps:$4 sm:$0xff]   ;;  %v1065_v27 = vld [vmem:[%s1615_s3 + $0x100] ss:$16 sps:$4 sm:$0xff]   ;;  %v1102_v34 = vld [vmem:[%s1615_s3 + $0xac] ss:$16 sps:$4 sm:$0xff]  }
   0xb   :  { %v1066_v28 = vld [vmem:[%s1615_s3 + $0x124] ss:$16 sps:$4 sm:$0xff]   ;;  %565 = vmatpush1.bf16.msra.mxu1 %v1095_v25  ;;  %v1068_v31 = vld [vmem:[%s1615_s3 + $0x120] ss:$16 sps:$4 sm:$0xff]   ;;  %v1104_v37 = vld [vmem:[%s1615_s3 + $0xa8] ss:$16 sps:$4 sm:$0xff]  }
   0xc   :  { %317 = vmatpush1.bf16.msra.mxu0 %v1047_v8  ;;  %566 = vmatprep.subr.bf16.mxu1 %v1096_v26  ;;  %v1069_v32 = vld [vmem:[%s1615_s3 + $0x144] ss:$16 sps:$4 sm:$0xff]   ;;  %v1071_v35 = vld [vmem:[%s1615_s3 + $0x140] ss:$16 sps:$4 sm:$0xff]   ;;  %v1105_v38 = vld [vmem:[%s1615_s3 + $0xcc] ss:$16 sps:$4 sm:$0xff]  }
   0xd   :  { %318 = vmatprep.subr.bf16.mxu0 %v1048_v9  ;;  %v1072_v36 = vld [vmem:[%s1615_s3 + $0x164] ss:$16 sps:$4 sm:$0xff]   ;;  %v1074_v39 = vld [vmem:[%s1615_s3 + $0x160] ss:$16 sps:$4 sm:$0xff]   ;;  %v1107_v41 = vld [vmem:[%s1615_s3 + $0xc8] ss:$16 sps:$4 sm:$0xff]  }
   0xe   :  { %v1075_v40 = vld [vmem:[%s1615_s3 + $0x184] ss:$16 sps:$4 sm:$0xff]   ;;  %v1108_v42 = vld [vmem:[%s1615_s3 + $0xec] ss:$16 sps:$4 sm:$0xff]   ;;  %v1077_v43 = vld [vmem:[%s1615_s3 + $0x180] ss:$16 sps:$4 sm:$0xff]  }
   0xf   :  { %567 = vmatpush1.bf16.msra.mxu1 %v1098_v29  ;;  %v1078_v44 = vld [vmem:[%s1615_s3 + $0x1a4] ss:$16 sps:$4 sm:$0xff]   ;;  %v1110_v45 = vld [vmem:[%s1615_s3 + $0xe8] ss:$16 sps:$4 sm:$0xff]   ;;  %v1111_v46 = vld [vmem:[%s1615_s3 + $0x10c] ss:$16 sps:$4 sm:$0xff]  }
  0x10   :  { %319 = vmatpush1.bf16.msra.mxu0 %v1050_v10  ;;  %568 = vmatprep.subr.bf16.mxu1 %v1099_v30  ;;  %v1080_v47 = vld [vmem:[%s1615_s3 + $0x1a0] ss:$16 sps:$4 sm:$0xff]   ;;  %v1081_v48 = vld [vmem:[%s1615_s3 + $0x1c4] ss:$16 sps:$4 sm:$0xff]   ;;  %v1113_v49 = vld [vmem:[%s1615_s3 + $0x108] ss:$16 sps:$4 sm:$0xff]  }
  0x11   :  { %320 = vmatprep.subr.bf16.mxu0 %v1051_v11  ;;  %v1114_v50 = vld [vmem:[%s1615_s3 + $0x12c] ss:$16 sps:$4 sm:$0xff]   ;;  %v1083_v51 = vld [vmem:[%s1615_s3 + $0x1c0] ss:$16 sps:$4 sm:$0xff]   ;;  %v1084_v52 = vld [vmem:[%s1615_s3 + $0x1e4] ss:$16 sps:$4 sm:$0xff]  }
  0x12   :  { %v1116_v53 = vld [vmem:[%s1615_s3 + $0x128] ss:$16 sps:$4 sm:$0xff]   ;;  %v1117_v54 = vld [vmem:[%s1615_s3 + $0x14c] ss:$16 sps:$4 sm:$0xff]   ;;  %v1086_v55 = vld [vmem:[%s1615_s3 + $0x1e0] ss:$16 sps:$4 sm:$0xff]  }
  0x13   :  { %569 = vmatpush1.bf16.msra.mxu1 %v1101_v33  ;;  %v1119_v56 = vld [vmem:[%s1615_s3 + $0x148] ss:$16 sps:$4 sm:$0xff]   ;;  %v1120_v57 = vld [vmem:[%s1615_s3 + $0x16c] ss:$16 sps:$4 sm:$0xff]   ;;  %v47_v0 = vshrl.u32 %v46_v63, 7 }
  0x14   :  { %321 = vmatpush1.bf16.msra.mxu0 %v1053_v12  ;;  %570 = vmatprep.subr.bf16.mxu1 %v1102_v34  ;;  %v1122_v58 = vld [vmem:[%s1615_s3 + $0x168] ss:$16 sps:$4 sm:$0xff]   ;;  %v1123_v59 = vld [vmem:[%s1615_s3 + $0x18c] ss:$16 sps:$4 sm:$0xff]   ;;  %v34_v3 = vld [vmem:[%s1616_s1] sm:$0xf] }
  0x15   :  { %322 = vmatprep.subr.bf16.mxu0 %v1054_v13  ;;  %v1125_v60 = vld [vmem:[%s1615_s3 + $0x188] ss:$16 sps:$4 sm:$0xff]   ;;  %v1126_v61 = vld [vmem:[%s1615_s3 + $0x1ac] ss:$16 sps:$4 sm:$0xff]   ;;  %v1370_v1 = vsub.s32 0, %v47_v0  ;;  %v52_v2 = vsub.s32 2, %v47_v0 }
  0x16   :  { %v1128_v62 = vld [vmem:[%s1615_s3 + $0x1a8] ss:$16 sps:$4 sm:$0xff]   ;;  %v1376_v6 = vsub.s32 1, %v47_v0  ;;  %v89_v7 = vsub.s32 3, %v47_v0  ;;  %v1132_v33 = vld [vmem:[%s1615_s3 + $0x1ec] ss:$16 sps:$4 sm:$0xff]  }
  0x17   :  { %571 = vmatpush1.bf16.msra.mxu1 %v1104_v37  ;;  %v49_v4 = vrot.slane %v34_v3, %v1370_v1  ;;  %v53_v5 = vrot.slane %v34_v3, %v52_v2  ;;  %v35_v8 = vld [vmem:[%s1617_s2] ss:$4 sm:$0x3]  ;;  %v1134_v34 = vld [vmem:[%s1615_s3 + $0x1e8] ss:$16 sps:$4 sm:$0xff]  }
  0x18   :  { %323 = vmatpush1.bf16.msra.mxu0 %v1056_v14  ;;  %572 = vmatprep.subr.bf16.mxu1 %v1105_v38  ;;  %v86_v11 = vrot.slane %v34_v3, %v1376_v6  ;;  %v90_v12 = vrot.slane %v34_v3, %v89_v7  ;;  %v70_v14 = vrot.slane %v35_v8, %v1370_v1  ;;  %v730_v37 = vld [vmem:[%s1619_s6 + $0x80] sm:$0xff]  ;;  %v628_v63 = vld [vmem:[%s1618_s4 + $0xc8] sm:$0xff]  ;;  %v630_v7 = vld [vmem:[%s1618_s4 + $0xd8] sm:$0xff] }
  0x19   :  { %324 = vmatprep.subr.bf16.mxu0 %v1057_v15  ;;  %v59_v9 = vrot.slane %v49_v4, %v1370_v1  ;;  %v63_v10 = vrot.slane %v53_v5, %v1370_v1  ;;  %v74_v15 = vrot.slane %v35_v8, %v1376_v6  ;;  %v611_v2 = vld [vmem:[%s1618_s4 + $0x40] sm:$0xff]  ;;  %v612_v3 = vld [vmem:[%s1618_s4 + $0x48] sm:$0xff]  ;;  %v629_v5 = vld [vmem:[%s1618_s4 + $0xd0] sm:$0xff] }
  0x1a   :  { %v100_v19 = vrot.slane %v90_v12, %v1376_v6  ;;  %v989_v4 = vpack.c.bf16 %v612_v3, %v611_v2  ;;  %v991_v8 = vpack.c.bf16 %v630_v7, %v629_v5  ;;  %v631_v12 = vld [vmem:[%s1618_s4 + $0xe0] sm:$0xff]  ;;  %v616_v2 = vld [vmem:[%s1618_s4 + $0x68] sm:$0xff] }
  0x1b   :  { %573 = vmatpush1.bf16.msra.mxu1 %v1107_v41  ;;  %v604_v41 = vld [vmem:[%s1618_s4 + $0x8] sm:$0xff]  ;;  %v726_v3 = vld [vmem:[%s1619_s6 + $0x60] sm:$0xff] }
  0x1c   :  { %325 = vmatpush1.bf16.msra.mxu0 %v1059_v18  ;;  %574 = vmatprep.subr.bf16.mxu1 %v1108_v42  ;;  %v96_v18 = vrot.slane %v86_v11, %v1376_v6  ;;  %v727_v5 = vld [vmem:[%s1619_s6 + $0x68] sm:$0xff] }
  0x1d   :  { %326 = vmatprep.subr.bf16.mxu0 %v1060_v20  ;;  %v1029_v7 = vpack.c.bf16 %v727_v5, %v726_v3 }
  0x1f   :  { %575 = vmatpush1.bf16.msra.mxu1 %v1110_v45  ;;  %v622_v45 = vld [vmem:[%s1618_s4 + $0x98] sm:$0xff] }
  0x20   :  { %327 = vmatpush1.bf16.msra.mxu0 %v1062_v23  ;;  %576 = vmatprep.subr.bf16.mxu1 %v1111_v46 }
  0x21   :  { %328 = vmatprep.subr.bf16.mxu0 %v1063_v24 }
  0x23   :  { %577 = vmatpush1.bf16.msra.mxu1 %v1113_v49 }
  0x24   :  { %329 = vmatpush1.bf16.msra.mxu0 %v1065_v27  ;;  %578 = vmatprep.subr.bf16.mxu1 %v1114_v50  ;;  %v623_v50 = vld [vmem:[%s1618_s4 + $0xa0] sm:$0xff] }
  0x25   :  { %330 = vmatprep.subr.bf16.mxu0 %v1066_v28 }
  0x27   :  { %579 = vmatpush1.bf16.msra.mxu1 %v1116_v53  ;;  %v607_v53 = vld [vmem:[%s1618_s4 + $0x20] sm:$0xff] }
  0x28   :  { %331 = vmatpush1.bf16.msra.mxu0 %v1068_v31  ;;  %580 = vmatprep.subr.bf16.mxu1 %v1117_v54  ;;  %v1129_v31 = vld [vmem:[%s1615_s3 + $0x1cc] ss:$16 sps:$4 sm:$0xff]  }
  0x29   :  { %332 = vmatprep.subr.bf16.mxu0 %v1069_v32  ;;  %v1131_v32 = vld [vmem:[%s1615_s3 + $0x1c8] ss:$16 sps:$4 sm:$0xff]  }
  0x2a   :  { %v608_v54 = vld [vmem:[%s1618_s4 + $0x28] sm:$0xff] }
  0x2b   :  { %581 = vmatpush1.bf16.msra.mxu1 %v1119_v56  ;;  %v625_v56 = vld [vmem:[%s1618_s4 + $0xb0] sm:$0xff] }
  0x2c   :  { %333 = vmatpush1.bf16.msra.mxu0 %v1071_v35  ;;  %582 = vmatprep.subr.bf16.mxu1 %v1120_v57  ;;  %v619_v35 = vld [vmem:[%s1618_s4 + $0x80] sm:$0xff]  ;;  %v626_v57 = vld [vmem:[%s1618_s4 + $0xb8] sm:$0xff] }
  0x2d   :  { %334 = vmatprep.subr.bf16.mxu0 %v1072_v36  ;;  %v620_v36 = vld [vmem:[%s1618_s4 + $0x88] sm:$0xff] }
  0x2e   :  { %v971_v38 = vpack.c.bf16 %v620_v36, %v619_v35  ;;  %v717_v35 = vld [vmem:[%s1619_s6 + $0x18] sm:$0xff]  ;;  %v734_v36 = vld [vmem:[%s1619_s6 + $0xa0] sm:$0xff] }
  0x2f   :  { %583 = vmatpush1.bf16.msra.mxu1 %v1122_v58  ;;  %v983_v58 = vpack.c.bf16 %v626_v57, %v625_v56 }
  0x30   :  { %335 = vmatpush1.bf16.msra.mxu0 %v1074_v39  ;;  %584 = vmatprep.subr.bf16.mxu1 %v1123_v59  ;;  %v731_v39 = vld [vmem:[%s1619_s6 + $0x88] sm:$0xff]  ;;  %v609_v59 = vld [vmem:[%s1618_s4 + $0x30] sm:$0xff] }
  0x31   :  { %336 = vmatprep.subr.bf16.mxu0 %v1075_v40  ;;  %v603_v40 = vld [vmem:[%s1618_s4] sm:$0xff]  ;;  %v1003_v42 = vpack.c.bf16 %v731_v39, %v730_v37  ;;  %v735_v37 = vld [vmem:[%s1619_s6 + $0xa8] sm:$0xff] }
  0x32   :  { %v1011_v39 = vpack.c.bf16 %v735_v37, %v734_v36 }
  0x33   :  { %585 = vmatpush1.bf16.msra.mxu1 %v1125_v60  ;;  %v610_v60 = vld [vmem:[%s1618_s4 + $0x38] sm:$0xff] }
  0x34   :  { %337 = vmatpush1.bf16.msra.mxu0 %v1077_v43  ;;  %586 = vmatprep.subr.bf16.mxu1 %v1126_v61  ;;  %v973_v43 = vpack.c.bf16 %v604_v41, %v603_v40  ;;  %v985_v61 = vpack.c.bf16 %v610_v60, %v609_v59  ;;  %v718_v40 = vld [vmem:[%s1619_s6 + $0x20] sm:$0xff]  ;;  %v719_v41 = vld [vmem:[%s1619_s6 + $0x28] sm:$0xff]  ;;  %v725_v59 = vld [vmem:[%s1619_s6 + $0x58] sm:$0xff] }
  0x35   :  { %338 = vmatprep.subr.bf16.mxu0 %v1078_v44  ;;  %v621_v44 = vld [vmem:[%s1618_s4 + $0x90] sm:$0xff]  ;;  %v742_v60 = vld [vmem:[%s1619_s6 + $0xe0] sm:$0xff] }
  0x36   :  { %v975_v46 = vpack.c.bf16 %v622_v45, %v621_v44  ;;  %v1013_v44 = vpack.c.bf16 %v719_v41, %v718_v40 }
  0x37   :  { %587 = vmatpush1.bf16.msra.mxu1 %v1128_v62  ;;  %v627_v62 = vld [vmem:[%s1618_s4 + $0xc0] sm:$0xff] }
  0x38   :  { %339 = vmatpush1.bf16.msra.mxu0 %v1080_v47  ;;  %588 = vmatprep.subr.bf16.mxu1 %v1129_v31  ;;  %v605_v47 = vld [vmem:[%s1618_s4 + $0x10] sm:$0xff]  ;;  %v987_v0 = vpack.c.bf16 %v628_v63, %v627_v62 }
  0x39   :  { %340 = vmatprep.subr.bf16.mxu0 %v1081_v48  ;;  %v606_v48 = vld [vmem:[%s1618_s4 + $0x18] sm:$0xff] }
  0x3a   :  { %v977_v49 = vpack.c.bf16 %v606_v48, %v605_v47  ;;  %v721_v47 = vld [vmem:[%s1619_s6 + $0x38] sm:$0xff]  ;;  %v738_v48 = vld [vmem:[%s1619_s6 + $0xc0] sm:$0xff] }
  0x3b   :  { %589 = vmatpush1.bf16.msra.mxu1 %v1131_v32 }
  0x3c   :  { %341 = vmatpush1.bf16.msra.mxu0 %v1083_v51  ;;  %590 = vmatprep.subr.bf16.mxu1 %v1132_v33  ;;  %v624_v51 = vld [vmem:[%s1618_s4 + $0xa8] sm:$0xff] }
  0x3d   :  { %342 = vmatprep.subr.bf16.mxu0 %v1084_v52  ;;  %v979_v52 = vpack.c.bf16 %v624_v51, %v623_v50 }
  0x3f   :  { %591 = vmatpush1.bf16.msra.mxu1 %v1134_v34  ;;  %v716_v34 = vld [vmem:[%s1619_s6 + $0x10] sm:$0xff] }
  0x40   :  { %343 = vmatpush1.bf16.msra.mxu0 %v1086_v55  ;;  %1004 = vmatprep.subr.bf16.mxu1 %v1003_v42  ;;  %v981_v55 = vpack.c.bf16 %v608_v54, %v607_v53  ;;  %v736_v42 = vld [vmem:[%s1619_s6 + $0xb0] sm:$0xff]  ;;  %v723_v53 = vld [vmem:[%s1619_s6 + $0x48] sm:$0xff] }
  0x41   :  { %972 = vmatprep.subr.bf16.mxu0 %v971_v38  ;;  %v1009_v38 = vpack.c.bf16 %v717_v35, %v716_v34  ;;  %v740_v54 = vld [vmem:[%s1619_s6 + $0xd0] sm:$0xff] }
  0x81   :  { %v43_v13 = vpop.permute.xlu0 %42 }
  0x82   :  { %v64_v16 = vmul.f32 %v59_v9, %v43_v13  ;;  %v65_v17 = vmul.f32 %v63_v10, %v43_v13  ;;  %v613_v9 = vld [vmem:[%s1618_s4 + $0x50] sm:$0xff]  ;;  %v614_v10 = vld [vmem:[%s1618_s4 + $0x58] sm:$0xff]  ;;  %v632_v13 = vld [vmem:[%s1618_s4 + $0xe8] sm:$0xff] }
  0x83   :  { %v993_v11 = vpack.c.bf16 %v614_v10, %v613_v9  ;;  %v634_v9 = vld [vmem:[%s1618_s4 + $0xf8] sm:$0xff]  ;;  %v744_v10 = vld [vmem:[%s1619_s6 + $0xf0] sm:$0xff] }
  0x84   :  { %v77_v21 = vadd.f32 %v70_v14, %v64_v16  ;;  %v78_v24 = vadd.f32 %v74_v15, %v65_v17  ;;  %v995_v14 = vpack.c.bf16 %v632_v13, %v631_v12  ;;  %v833_v15 = vld [vmem:[%s1617_s2 + $0x1] ss:$4 sm:$0x3]  ;;  %v745_v12 = vld [vmem:[%s1619_s6 + $0xf8] sm:$0xff]  ;;  %v617_v13 = vld [vmem:[%s1618_s4 + $0x70] sm:$0xff] }
  0x85   :  { %v145_v16 = vrot.slane %v833_v15, %v1370_v1  ;;  %v149_v17 = vrot.slane %v833_v15, %v1376_v6  ;;  %v1031_v15 = vpack.c.bf16 %v745_v12, %v744_v10 }
  0x86   :  { %v81_v20 = vpop.permute.xlu0 %80 }
  0x87   :  { %v101_v22 = vmul.f32 %v96_v18, %v81_v20  ;;  %v102_v23 = vmul.f32 %v100_v19, %v81_v20 }
  0x89   :  { %v103_v25 = vadd.f32 %v101_v22, %v77_v21  ;;  %v104_v26 = vadd.f32 %v102_v23, %v78_v24 }
  0x8b   :  { %v105_v27 = vmax.f32 %v103_v25, 0.0  ;;  %v106_v28 = vmax.f32 %v104_v26, 0.0  ;;  %v714_v25 = vld [vmem:[%s1619_s6] sm:$0xff]  ;;  %v715_v26 = vld [vmem:[%s1619_s6 + $0x8] sm:$0xff] }
  0x8c   :  { %v1005_v31 = vpack.c.bf16 %v715_v26, %v714_v25 }
  0x8d   :  { %v107_v29 = vpack.c.bf16 %v105_v27, %v105_v27  ;;  %v108_v30 = vpack.c.bf16 %v106_v28, %v106_v28  ;;  %v732_v28 = vld [vmem:[%s1619_s6 + $0x90] sm:$0xff] }
  0x8f   :  { %344 = vmatprep.mubr.bf16.mxu0 %v108_v30 }
  0x90   :  { %345 = vmatmul.mubr.bf16.vlgmr.msra.gmra.mrb[0].mxu0 %v107_v29  ;;  %v733_v29 = vld [vmem:[%s1619_s6 + $0x98] sm:$0xff] }
  0x91   :  { %974 = vmatpush3.bf16.msra.mxu0 %v973_v43  ;;  %v1007_v33 = vpack.c.bf16 %v733_v29, %v732_v28  ;;  %v737_v43 = vld [vmem:[%s1619_s6 + $0xb8] sm:$0xff] }
  0x92   :  { %976 = vmatprep.subr.bf16.mxu0 %v975_v46  ;;  %v1015_v45 = vpack.c.bf16 %v737_v43, %v736_v42  ;;  %v720_v46 = vld [vmem:[%s1619_s6 + $0x30] sm:$0xff] }
  0x93   :  { %v1017_v50 = vpack.c.bf16 %v721_v47, %v720_v46 }
  0x95   :  { %978 = vmatpush3.bf16.msra.mxu0 %v977_v49  ;;  %v739_v49 = vld [vmem:[%s1619_s6 + $0xc8] sm:$0xff] }
  0x96   :  { %980 = vmatprep.subr.bf16.mxu0 %v979_v52  ;;  %v1019_v51 = vpack.c.bf16 %v739_v49, %v738_v48  ;;  %v722_v52 = vld [vmem:[%s1619_s6 + $0x40] sm:$0xff] }
  0x97   :  { %v1021_v56 = vpack.c.bf16 %v723_v53, %v722_v52 }
  0x99   :  { %982 = vmatpush3.bf16.msra.mxu0 %v981_v55  ;;  %v741_v55 = vld [vmem:[%s1619_s6 + $0xd8] sm:$0xff] }
  0x9a   :  { %984 = vmatprep.subr.bf16.mxu0 %v983_v58  ;;  %v1023_v57 = vpack.c.bf16 %v741_v55, %v740_v54  ;;  %v724_v58 = vld [vmem:[%s1619_s6 + $0x50] sm:$0xff] }
  0x9b   :  { %v1025_v62 = vpack.c.bf16 %v725_v59, %v724_v58 }
  0x9d   :  { %986 = vmatpush3.bf16.msra.mxu0 %v985_v61  ;;  %v743_v61 = vld [vmem:[%s1619_s6 + $0xe8] sm:$0xff] }
  0x9e   :  { %988 = vmatprep.subr.bf16.mxu0 %v987_v0  ;;  %v1027_v63 = vpack.c.bf16 %v743_v61, %v742_v60  ;;  %v615_v0 = vld [vmem:[%s1618_s4 + $0x60] sm:$0xff] }
  0xa1   :  { %990 = vmatpush3.bf16.msra.mxu0 %v989_v4  ;;  %v997_v4 = vpack.c.bf16 %v616_v2, %v615_v0 }
  0xa2   :  { %992 = vmatprep.subr.bf16.mxu0 %v991_v8  ;;  %v633_v8 = vld [vmem:[%s1618_s4 + $0xf0] sm:$0xff] }
  0xa5   :  { %994 = vmatpush3.bf16.msra.mxu0 %v993_v11  ;;  %v999_v11 = vpack.c.bf16 %v634_v9, %v633_v8 }
  0xa6   :  { %996 = vmatprep.subr.bf16.mxu0 %v995_v14  ;;  %v618_v14 = vld [vmem:[%s1618_s4 + $0x78] sm:$0xff] }
  0xa9   :  { %998 = vmatpush3.bf16.msra.mxu0 %v997_v4 }
  0xaa   :  { %1000 = vmatprep.subr.bf16.mxu0 %v999_v11 }
 0x163   :  { %v346_v18 = vpop.f32.mrb[0].mxu0 }
 0x164   :  { %v347_v19 = vadd.f32 %v346_v18, %v145_v16  ;;  %v348_v20 = vpop.f32.mrb[1].mxu0  ;;  %v1001_v16 = vpack.c.bf16 %v618_v14, %v617_v13  ;;  %v729_v18 = vld [vmem:[%s1619_s6 + $0x78] sm:$0xff] }
 0x165   :  { %v349_v21 = vadd.f32 %v348_v20, %v149_v17  ;;  %v350_v22 = vpop.f32.mrb[2].mxu0  ;;  %v728_v17 = vld [vmem:[%s1619_s6 + $0x70] sm:$0xff]  ;;  %v834_v20 = vld [vmem:[%s1617_s2 + $0x2] ss:$4 sm:$0x3] }
 0x166   :  { %v353_v23 = vmax.f32 %v347_v19, 0.0  ;;  %v351_v24 = vpop.f32.mrb[3].mxu0  ;;  %v1033_v19 = vpack.c.bf16 %v729_v18, %v728_v17  ;;  %1002 = vmatpush3.bf16.msra.mxu0 %v1001_v16  ;;  %v397_v22 = vrot.slane %v834_v20, %v1376_v6  ;;  %v899_v6 = vld [vmem:[%s1621_s5] ss:$0 sm:$0xff] }
 0x167   :  { %v354_v27 = vmax.f32 %v349_v21, 0.0  ;;  %v393_v21 = vrot.slane %v834_v20, %v1370_v1 }
 0x168   :  { %v355_v32 = vpack.c.bf16 %v353_v23, %v353_v23 }
 0x169   :  { %v356_v30 = vpack.c.bf16 %v354_v27, %v354_v27 }
 0x16b   :  { %592 = vmatprep.mubr.bf16.mxu1 %v356_v30 }
 0x16c   :  { %593 = vmatmul.mubr.bf16.vlgmr.msra.gmra.mrb[0].mxu1 %v355_v32 }
 0x16d   :  { %1006 = vmatpush3.bf16.msra.mxu1 %v1005_v31  ;;  %v15_v31 = vstv %s1620_s7 }
 0x16e   :  { %1008 = vmatprep.subr.bf16.mxu1 %v1007_v33  ;;  %16 = vst [vmem:[#allocation2] sm:$0x1] %v15_v31 }
 0x171   :  { %1010 = vmatpush3.bf16.msra.mxu1 %v1009_v38 }
 0x172   :  { %1012 = vmatprep.subr.bf16.mxu1 %v1011_v39 }
 0x175   :  { %1014 = vmatpush3.bf16.msra.mxu1 %v1013_v44  ;;  %v900_v34 = vld [vmem:[#allocation2] ss:$0 sm:$0xff] }
 0x176   :  { %1016 = vmatprep.subr.bf16.mxu1 %v1015_v45 }
 0x179   :  { %1018 = vmatpush3.bf16.msra.mxu1 %v1017_v50 }
 0x17a   :  { %1020 = vmatprep.subr.bf16.mxu1 %v1019_v51 }
 0x17d   :  { %1022 = vmatpush3.bf16.msra.mxu1 %v1021_v56 }
 0x17e   :  { %1024 = vmatprep.subr.bf16.mxu1 %v1023_v57 }
 0x181   :  { %1026 = vmatpush3.bf16.msra.mxu1 %v1025_v62 }
 0x182   :  { %1028 = vmatprep.subr.bf16.mxu1 %v1027_v63 }
 0x185   :  { %1030 = vmatpush3.bf16.msra.mxu1 %v1029_v7 }
 0x186   :  { %1032 = vmatprep.subr.bf16.mxu1 %v1031_v15 }
 0x189   :  { %1034 = vmatpush3.bf16.msra.mxu1 %v1033_v19 }
 0x23f   :  { %v594_v23 = vpop.f32.mrb[0].mxu1 }
 0x240   :  { %v595_v24 = vadd.f32 %v594_v23, %v393_v21  ;;  %v596_v25 = vpop.f32.mrb[1].mxu1 }
 0x241   :  { %v597_v26 = vadd.f32 %v596_v25, %v397_v22  ;;  %v598_v27 = vpop.f32.mrb[2].mxu1 }
 0x242   :  { %v599_v28 = vpop.f32.mrb[3].mxu1  ;;  %v601_v30 = vmax.f32 %v595_v24, 0.0 }
 0x243   :  { %v602_v29 = vmax.f32 %v597_v26, 0.0 }
 0x245   :  { %706 = vmatprep.mubr.f32.mxu0 %v602_v29  ;;  %817 = vmatprep.mubr.f32.mxu1 %v602_v29 }
 0x246   :  { %707 = vmatmul.mubr.f32.vlgmr.msra.gmra.mrb[4].mxu0 %v601_v30  ;;  %818 = vmatmul.mubr.f32.vlgmr.msra.gmra.mrb[4].mxu1 %v601_v30 }
 0x319   :  { %v933_v1 = vpop.f32.mrb[4].mxu0  ;;  %v968_v32 = vpop.f32.mrb[4].mxu1 }
 0x31a   :  { %v934_v33 = vpop.f32.mrb[5].mxu0  ;;  %v969_v35 = vpop.f32.mrb[5].mxu1 }
 0x31b   :  { %v935_v36 = vadd.f32 %v934_v33, %v933_v1  ;;  %v970_v37 = vadd.f32 %v969_v35, %v968_v32 }
 0x31d   :  { %v709_v38 = vadd.f32 %v935_v36, %v899_v6  ;;  %v820_v39 = vadd.f32 %v970_v37, %v900_v34 }
 0x31f   :  { %713 = vst.msk [vmem:[%s1622_s8] sm:$0xff] %vm712_vm0, %v709_v38 }
 0x320   :  { %824 = vst.msk [vmem:[%s1623_s9] sm:$0xff] %vm823_vm1, %v820_v39 }

</bundles_post_ra>
